<compile_context>
chip_gen: v6e
topology: v6e:2x2x1
jax: 0.10.0
libtpu: 0.0.40
codegen_flags: <defaults>
</compile_context>

<pallas_src>
import functools

import jax
import jax.numpy as jnp
from jax.experimental import pallas as pl
from jax.experimental.pallas import tpu as pltpu

_HID = 128  # hidden width of fc1/fc2


def _round_up(x, m):
    return (x + m - 1) // m * m


def _mlp_kernel(out_dim, z_ref, w1_ref, b1_ref, w2_ref, b2_ref, w3_ref,
                b3_ref, o_ref):
    # fc1: Linear(latent_dim, 128) + ReLU.  bf16 MXU matmul, f32 accumulate,
    # f32 elementwise (portable to v5e, which has no bf16 VALU).
    h = jnp.dot(z_ref[...].astype(jnp.bfloat16), w1_ref[...],
                preferred_element_type=jnp.float32)
    h = jnp.maximum(h + b1_ref[...], 0.0)

    # fc2: Linear(128, 128) + ReLU.
    h = jnp.dot(h.astype(jnp.bfloat16), w2_ref[...],
                preferred_element_type=jnp.float32)
    h = jnp.maximum(h + b2_ref[...], 0.0)

    # fc3: full-lane-width MXU matmul on the padded weight, then slice to
    # out_dim in-kernel so only out_dim lanes hit HBM.
    out = jnp.dot(h.astype(jnp.bfloat16), w3_ref[...],
                  preferred_element_type=jnp.float32)
    o_ref[...] = (out[:, :out_dim] + b3_ref[...]).astype(o_ref.dtype)


def prepare_params(params, out_dim):
    """One-time weight preprocessing: bf16 matmul operands, f32 biases,
    fc3 weight zero-padded to a 128-lane multiple."""
    out_pad = _round_up(out_dim, 128)
    w3p = (jnp.zeros((_HID, out_pad), jnp.float32)
           .at[:, :out_dim].set(params["w3"].astype(jnp.float32))
           .astype(jnp.bfloat16))
    return {
        "w1": params["w1"].astype(jnp.bfloat16),
        "b1": params["b1"].astype(jnp.float32).reshape(1, -1),
        "w2": params["w2"].astype(jnp.bfloat16),
        "b2": params["b2"].astype(jnp.float32).reshape(1, -1),
        "w3": w3p,
        "b3": params["b3"].astype(jnp.float32).reshape(1, -1),
    }


@functools.partial(jax.jit, static_argnames=("out_dim",))
def mhd_muse_top_decoder(z, prepared, out_dim):
    """z: (B, latent_dim) float32.  prepared: output of prepare_params."""
    B, latent_dim = z.shape

    # Batch tile: big tiles amortize the ~0.35 us per-step overhead; for
    # B > 256 always produce >= 2 grid steps so both v7x TensorCores work.
    if B <= 256:
        TM = _round_up(B, 8)
    else:
        TM = min(1024, _round_up(pl.cdiv(B, 2), 256))
    grid = (pl.cdiv(B, TM),)

    def resident(arr):
        # Constant block index -> weight stays VMEM-resident across the grid.
        return pl.BlockSpec(arr.shape, lambda i: (0, 0))

    p = prepared
    out = pl.pallas_call(
        functools.partial(_mlp_kernel, out_dim),
        out_shape=jax.ShapeDtypeStruct((B, out_dim), jnp.float32),
        grid_spec=pltpu.PrefetchScalarGridSpec(
            num_scalar_prefetch=0,
            grid=grid,
            in_specs=[
                pl.BlockSpec((TM, latent_dim), lambda i: (i, 0)),  # z tile
                resident(p["w1"]), resident(p["b1"]),
                resident(p["w2"]), resident(p["b2"]),
                resident(p["w3"]), resident(p["b3"]),
            ],
            out_specs=pl.BlockSpec((TM, out_dim), lambda i: (i, 0)),
        ),
        compiler_params=pltpu.CompilerParams(
            dimension_semantics=("parallel",)),
    )(z, p["w1"], p["b1"], p["w2"], p["b2"], p["w3"], p["b3"])
    return out


def init_params(key, latent_dim, out_dim):
    """Deterministic PyTorch-style (uniform +-1/sqrt(fan_in)) init, weights (in, out)."""
    def linear(key, fan_in, fan_out):
        kw, kb = jax.random.split(key)
        bound = 1.0 / jnp.sqrt(fan_in)
        w = jax.random.uniform(kw, (fan_in, fan_out), jnp.float32, -bound, bound)
        b = jax.random.uniform(kb, (1, fan_out), jnp.float32, -bound, bound)
        return w, b

    k1, k2, k3 = jax.random.split(key, 3)
    w1, b1 = linear(k1, latent_dim, _HID)
    w2, b2 = linear(k2, _HID, _HID)
    w3, b3 = linear(k3, _HID, out_dim)
    return {"w1": w1, "b1": b1, "w2": w2, "b2": b2, "w3": w3, "b3": b3}


def _reference(z, params):
    """Pure-JAX reference mirroring the kernel's bf16-matmul / f32-elementwise math."""
    bf = jnp.bfloat16
    h = jnp.dot(z.astype(bf), params["w1"].astype(bf),
                preferred_element_type=jnp.float32) + params["b1"]
    h = jnp.maximum(h, 0.0)
    h = jnp.dot(h.astype(bf), params["w2"].astype(bf),
                preferred_element_type=jnp.float32) + params["b2"]
    h = jnp.maximum(h, 0.0)
    return jnp.dot(h.astype(bf), params["w3"].astype(bf),
                   preferred_element_type=jnp.float32) + params["b3"]


if __name__ == "__main__":
    latent_dim = 20
    out_dim = 64
    batch = 8

    key = jax.random.PRNGKey(0)
    k_params, k_z = jax.random.split(key)
    params = init_params(k_params, latent_dim, out_dim)
    prepared = prepare_params(params, out_dim)  # hoisted, one-time
    z = jax.random.normal(k_z, (batch, latent_dim), jnp.float32)

    out = mhd_muse_top_decoder(z, prepared, out_dim)
    out = jax.block_until_ready(out)

    ref = _reference(z, params)
    assert out.shape == (batch, out_dim), out.shape
    assert jnp.allclose(out, ref, atol=2e-2, rtol=2e-2), float(
        jnp.max(jnp.abs(out - ref)))

    print("KERNEL_OK")
</pallas_src>

<mosaic_0001>
module attributes {stable_mosaic.version = 11 : i64} {
  func.func @_mlp_kernel(%arg0: i32, %arg1: memref<8x20xf32, #tpu.memory_space<vmem>>, %arg2: memref<20x128xbf16, #tpu.memory_space<vmem>>, %arg3: memref<1x128xf32, #tpu.memory_space<vmem>>, %arg4: memref<128x128xbf16, #tpu.memory_space<vmem>>, %arg5: memref<1x128xf32, #tpu.memory_space<vmem>>, %arg6: memref<128x128xbf16, #tpu.memory_space<vmem>>, %arg7: memref<1x64xf32, #tpu.memory_space<vmem>>, %arg8: memref<8x64xf32, #tpu.memory_space<vmem>>) attributes {dimension_semantics = [#tpu.dimension_semantics<parallel>], iteration_bounds = array<i64: 1>, scalar_prefetch = 0 : i64, scratch_operands = 0 : i64, tpu.core_type = #tpu.core_type<tc>, window_params = [{transform_indices = @transform_0, window_bounds = array<i64: 8, 20>}, {pipeline_mode = #tpu.pipeline_mode<synchronous>, transform_indices = @transform_1, window_bounds = array<i64: 20, 128>}, {pipeline_mode = #tpu.pipeline_mode<synchronous>, transform_indices = @transform_2, window_bounds = array<i64: 1, 128>}, {pipeline_mode = #tpu.pipeline_mode<synchronous>, transform_indices = @transform_3, window_bounds = array<i64: 128, 128>}, {pipeline_mode = #tpu.pipeline_mode<synchronous>, transform_indices = @transform_4, window_bounds = array<i64: 1, 128>}, {pipeline_mode = #tpu.pipeline_mode<synchronous>, transform_indices = @transform_5, window_bounds = array<i64: 128, 128>}, {pipeline_mode = #tpu.pipeline_mode<synchronous>, transform_indices = @transform_6, window_bounds = array<i64: 1, 64>}, {transform_indices = @transform_7, window_bounds = array<i64: 8, 64>}]} {
    %c0 = arith.constant 0 : index
    %c0_0 = arith.constant 0 : index
    %0 = vector.load %arg1[%c0, %c0_0] : memref<8x20xf32, #tpu.memory_space<vmem>>, vector<8x20xf32>
    %1 = arith.truncf %0 : vector<8x20xf32> to vector<8x20xbf16>
    %c0_1 = arith.constant 0 : index
    %c0_2 = arith.constant 0 : index
    %2 = vector.load %arg2[%c0_1, %c0_2] : memref<20x128xbf16, #tpu.memory_space<vmem>>, vector<20x128xbf16>
    %cst = arith.constant dense<0.000000e+00> : vector<8x128xf32>
    %3 = tpu.matmul %1, %2, %cst {dimension_numbers = #tpu.dot_dimension_numbers<[1], [0], [0], [1], [0, 0, 1, 1], [], []>} : vector<8x20xbf16>, vector<20x128xbf16>, vector<8x128xf32> -> vector<8x128xf32>
    %c0_3 = arith.constant 0 : index
    %c0_4 = arith.constant 0 : index
    %4 = vector.load %arg3[%c0_3, %c0_4] : memref<1x128xf32, #tpu.memory_space<vmem>>, vector<1x128xf32>
    %5 = vector.broadcast %4 : vector<1x128xf32> to vector<8x128xf32>
    %6 = arith.addf %3, %5 : vector<8x128xf32>
    %cst_5 = arith.constant 0.000000e+00 : f32
    %7 = vector.broadcast %cst_5 : f32 to vector<8x128xf32>
    %8 = arith.maximumf %6, %7 : vector<8x128xf32>
    %9 = arith.truncf %8 : vector<8x128xf32> to vector<8x128xbf16>
    %c0_6 = arith.constant 0 : index
    %c0_7 = arith.constant 0 : index
    %10 = vector.load %arg4[%c0_6, %c0_7] : memref<128x128xbf16, #tpu.memory_space<vmem>>, vector<128x128xbf16>
    %cst_8 = arith.constant dense<0.000000e+00> : vector<8x128xf32>
    %11 = tpu.matmul %9, %10, %cst_8 {dimension_numbers = #tpu.dot_dimension_numbers<[1], [0], [0], [1], [0, 0, 1, 1], [], []>} : vector<8x128xbf16>, vector<128x128xbf16>, vector<8x128xf32> -> vector<8x128xf32>
    %c0_9 = arith.constant 0 : index
    %c0_10 = arith.constant 0 : index
    %12 = vector.load %arg5[%c0_9, %c0_10] : memref<1x128xf32, #tpu.memory_space<vmem>>, vector<1x128xf32>
    %13 = vector.broadcast %12 : vector<1x128xf32> to vector<8x128xf32>
    %14 = arith.addf %11, %13 : vector<8x128xf32>
    %cst_11 = arith.constant 0.000000e+00 : f32
    %15 = vector.broadcast %cst_11 : f32 to vector<8x128xf32>
    %16 = arith.maximumf %14, %15 : vector<8x128xf32>
    %17 = arith.truncf %16 : vector<8x128xf32> to vector<8x128xbf16>
    %c0_12 = arith.constant 0 : index
    %c0_13 = arith.constant 0 : index
    %18 = vector.load %arg6[%c0_12, %c0_13] : memref<128x128xbf16, #tpu.memory_space<vmem>>, vector<128x128xbf16>
    %cst_14 = arith.constant dense<0.000000e+00> : vector<8x128xf32>
    %19 = tpu.matmul %17, %18, %cst_14 {dimension_numbers = #tpu.dot_dimension_numbers<[1], [0], [0], [1], [0, 0, 1, 1], [], []>} : vector<8x128xbf16>, vector<128x128xbf16>, vector<8x128xf32> -> vector<8x128xf32>
    %20 = vector.extract_strided_slice %19 {offsets = [0, 0], sizes = [8, 64], strides = [1, 1]} : vector<8x128xf32> to vector<8x64xf32>
    %c0_15 = arith.constant 0 : index
    %c0_16 = arith.constant 0 : index
    %21 = vector.load %arg7[%c0_15, %c0_16] : memref<1x64xf32, #tpu.memory_space<vmem>>, vector<1x64xf32>
    %22 = vector.broadcast %21 : vector<1x64xf32> to vector<8x64xf32>
    %23 = arith.addf %20, %22 : vector<8x64xf32>
    %c0_17 = arith.constant 0 : index
    %c0_18 = arith.constant 0 : index
    %24 = vector.load %arg8[%c0_17, %c0_18] : memref<8x64xf32, #tpu.memory_space<vmem>>, vector<8x64xf32>
    tpu.vector_store %arg8[%c0_17, %c0_18], %23 {strides = array<i32>} : memref<8x64xf32, #tpu.memory_space<vmem>>, vector<8x64xf32>,
    return
  }
  func.func @transform_0(%arg0: i32) -> (i32, i32) {
    %c0_i32 = arith.constant 0 : i32
    %c0_i32_0 = arith.constant 0 : i32
    return %arg0, %c0_i32 : i32, i32
  }
  func.func @transform_1(%arg0: i32) -> (i32, i32) {
    %c0_i32 = arith.constant 0 : i32
    %c0_i32_0 = arith.constant 0 : i32
    %c0_i32_1 = arith.constant 0 : i32
    return %c0_i32, %c0_i32_0 : i32, i32
  }
  func.func @transform_2(%arg0: i32) -> (i32, i32) {
    %c0_i32 = arith.constant 0 : i32
    %c0_i32_0 = arith.constant 0 : i32
    %c0_i32_1 = arith.constant 0 : i32
    return %c0_i32, %c0_i32_0 : i32, i32
  }
  func.func @transform_3(%arg0: i32) -> (i32, i32) {
    %c0_i32 = arith.constant 0 : i32
    %c0_i32_0 = arith.constant 0 : i32
    %c0_i32_1 = arith.constant 0 : i32
    return %c0_i32, %c0_i32_0 : i32, i32
  }
  func.func @transform_4(%arg0: i32) -> (i32, i32) {
    %c0_i32 = arith.constant 0 : i32
    %c0_i32_0 = arith.constant 0 : i32
    %c0_i32_1 = arith.constant 0 : i32
    return %c0_i32, %c0_i32_0 : i32, i32
  }
  func.func @transform_5(%arg0: i32) -> (i32, i32) {
    %c0_i32 = arith.constant 0 : i32
    %c0_i32_0 = arith.constant 0 : i32
    %c0_i32_1 = arith.constant 0 : i32
    return %c0_i32, %c0_i32_0 : i32, i32
  }
  func.func @transform_6(%arg0: i32) -> (i32, i32) {
    %c0_i32 = arith.constant 0 : i32
    %c0_i32_0 = arith.constant 0 : i32
    %c0_i32_1 = arith.constant 0 : i32
    return %c0_i32, %c0_i32_0 : i32, i32
  }
  func.func @transform_7(%arg0: i32) -> (i32, i32) {
    %c0_i32 = arith.constant 0 : i32
    %c0_i32_0 = arith.constant 0 : i32
    return %arg0, %c0_i32 : i32, i32
  }
}

</mosaic_0001>

<bundles_post_ra>
// kernel: mhd_muse_top_decoder.1
= control target key start
LH: loop header
LB: loop body
LE: loop exit
PB: predicated region body
PF: predicated region fallthrough
CT: control target
= control target key end

     0   :  { %12 = vsyncpa [#allocation3], 0  ;;  %s728_s0 = inlined_call_operand.hbm [shape: f32[8,20], index: 0, kind: input, shape index: {}]   ;;  %s729_s1 = inlined_call_operand.hbm [shape: bf16[20,128], index: 1, kind: input, shape index: {}]   ;;  %s730_s2 = inlined_call_operand.vmem [shape: f32[1,128], index: 2, kind: input, shape index: {}]   ;;  %s731_s3 = inlined_call_operand.hbm [shape: bf16[128,128], index: 3, kind: input, shape index: {}]   ;;  %s732_s4 = inlined_call_operand.vmem [shape: f32[1,128], index: 4, kind: input, shape index: {}]   ;;  %s733_s5 = inlined_call_operand.hbm [shape: bf16[128,128], index: 5, kind: input, shape index: {}]   ;;  %s734_s6 = inlined_call_operand.vmem [shape: f32[1,64], index: 6, kind: input, shape index: {}]   ;;  %s735_s7 = inlined_call_operand.hbm [shape: f32[8,64], index: 7, kind: output, shape index: {}]  }
   0x1   :  { %13 = vsyncpa [#allocation6], 0 }
   0x2   :  { %14 = vsyncpa [#allocation9], 0 }
   0x3   :  { %15 = vsyncpa [#allocation4], 0  ;;  %s622_s24 = smov [#allocation5]  }
   0x4   :  { %s31_s25 = sshll.u32 %s622_s24, 4  ;;  %s32_s25 = int_to_ptr.vmem [resolvable:$true] %s31_s25 }
   0x5   :  { %s522_s26 = scalar_lea.vmem %s32_s25, 192  ;;  %p527_p1 = scmp.lt.s32.totalorder %s32_s25, %s32_s25 }
   0x6   :  { %p523_p0 = scmp.ne.s32.totalorder %s32_s25, %s522_s26  ;;  %p528_p2 = scmp.lt.s32.totalorder %s522_s26, %s522_s26 }
   0x8   :  { %p529_p3 = por %p528_p2, %p527_p1 }
   0xa   :  { %p530_p4 = pnand %p529_p3, %p523_p0 }
   0xc   :  { %533 = shalt.err (!%p530_p4)
}
   0xd   :  { %s623_s27 = smov 64   ;;  %s624_s28 = smov 4  }
   0xe   :  { %37 = dma.hbm_to_vmem [thread:$0]  %s729_s1, 192, %s32_s25, [#allocation6], %s623_s27, %s623_s27, %s624_s28  }
   0xf   :  { %s625_s8 = smov [#allocation2]   ;;  %s626_s10 = smov [#allocation7]  }
  0x10   :  { %s22_s9 = sshll.u32 %s625_s8, 4  ;;  %s45_s11 = sshll.u32 %s626_s10, 4  ;;  %s23_s9 = int_to_ptr.vmem [resolvable:$true] %s22_s9  ;;  %s46_s11 = int_to_ptr.vmem [resolvable:$true] %s45_s11 }
  0x11   :  { %s542_s12 = scalar_lea.vmem %s23_s9, 128  ;;  %p547_p6 = scmp.lt.s32.totalorder %s23_s9, %s23_s9 }
  0x12   :  { %p543_p5 = scmp.ne.s32.totalorder %s23_s9, %s542_s12  ;;  %p548_p7 = scmp.lt.s32.totalorder %s542_s12, %s542_s12 }
  0x14   :  { %p549_p8 = por %p548_p7, %p547_p6 }
  0x16   :  { %p550_p9 = pnand %p549_p8, %p543_p5 }
  0x18   :  { %553 = shalt.err (!%p550_p9)
}
  0x19   :  { %25 = dma.hbm_to_vmem [thread:$0]  %s728_s0, 128, %s23_s9, [#allocation3]  }
  0x1a   :  { %s562_s15 = scalar_lea.vmem %s46_s11, 1024  ;;  %p567_p11 = scmp.lt.s32.totalorder %s46_s11, %s46_s11 }
  0x1b   :  { %p563_p10 = scmp.ne.s32.totalorder %s46_s11, %s562_s15  ;;  %p568_p12 = scmp.lt.s32.totalorder %s562_s15, %s562_s15 }
  0x1d   :  { %p569_p13 = por %p568_p12, %p567_p11 }
  0x1f   :  { %p570_p0 = pnand %p569_p13, %p563_p10 }
  0x21   :  { %573 = shalt.err (!%p570_p0)
}
  0x22   :  { %51 = dma.hbm_to_vmem [thread:$0]  %s731_s3, 1024, %s46_s11, [#allocation6], %s623_s27, %s623_s27, %s624_s28  }
  0x23   :  { %s627_s17 = smov [#allocation8]  }
  0x24   :  { %s59_s18 = sshll.u32 %s627_s17, 4  ;;  %s60_s18 = int_to_ptr.vmem [resolvable:$true] %s59_s18 }
  0x25   :  { %s582_s19 = scalar_lea.vmem %s60_s18, 1024  ;;  %p587_p2 = scmp.lt.s32.totalorder %s60_s18, %s60_s18 }
  0x26   :  { %p583_p1 = scmp.ne.s32.totalorder %s60_s18, %s582_s19  ;;  %p588_p3 = scmp.lt.s32.totalorder %s582_s19, %s582_s19 }
  0x28   :  { %p589_p4 = por %p588_p3, %p587_p2 }
  0x2a   :  { %p590_p5 = pnand %p589_p4, %p583_p1 }
  0x2c   :  { %593 = shalt.err (!%p590_p5)
}
  0x2d   :  { %65 = dma.hbm_to_vmem [thread:$0]  %s733_s5, 1024, %s60_s18, [#allocation9], %s623_s27, %s623_s27, %s624_s28  }
  0x2e   :  { %614 = dma.done.wait [#allocation3], 128  }
  0x2f   :  { %615 = vsyncadd [#allocation3], 4294967168 }
  0x30   :  { %616 = dma.done.wait [#allocation6], 1216  }
  0x31   :  { %617 = vsyncadd [#allocation6], 4294966080 }
  0x32   :  { %618 = dma.done.wait [#allocation9], 1024  }
  0x33   :  { %619 = vsyncadd [#allocation9], 4294966272  ;;  %v628_v0 = vmov 0.0   ;;  %vm629_vm0 = vmmov 0   ;;  %vm106_vm1 = vcmask 1041408   ;;  %v497_v2 = vld [vmem:[#allocation5] sm:$0xff]  }
  0x34   :  { %439 = vmatprep.subr.bf16.mxu0 %v628_v0  ;;  %443 = vmatprep.mubr.msk.bf16.mxu0 %vm629_vm0, %v628_v0  ;;  %v496_v1 = vld [vmem:[#allocation5 + $0x8] ss:$0 sps:$4 sm:$0x33]   ;;  %v81_v5 = vld [vmem:[#allocation2] sm:$0xff]  ;;  %vm102_vm2 = vcmask 162816   ;;  %v501_v9 = vld [vmem:[#allocation7 + $0x20] sm:$0xff]  }
  0x35   :  { %447 = vmatprep.subr.bf16.mxu1 %v628_v0  ;;  %463 = vmatprep.mubr.msk.bf16.mxu1 %vm629_vm0, %v628_v0  ;;  %v108_v3 = vsel %vm106_vm1, %v496_v1, 0  ;;  %v498_v4 = vld [vmem:[#allocation7 + $0x38] sm:$0xff]   ;;  %v499_v6 = vld [vmem:[#allocation7 + $0x30] sm:$0xff]   ;;  %v82_v7 = vpack.c.bf16 %v81_v5, %v81_v5  ;;  %v500_v8 = vld [vmem:[#allocation7 + $0x28] sm:$0xff]   ;;  %s630_s24 = smov [#allocation10]   ;;  %vm377_vm3 = vcmask 523264  }
  0x36   :  { %440 = vmatpush3.bf16.msra.mxu0 %v108_v3  ;;  %448 = vmatpush3.bf16.msra.mxu1 %v498_v4  ;;  %v502_v10 = vld [vmem:[#allocation7 + $0x18] sm:$0xff]   ;;  %v503_v11 = vld [vmem:[#allocation7 + $0x10] sm:$0xff]   ;;  %v504_v12 = vld [vmem:[#allocation7 + $0x8] sm:$0xff]   ;;  %s385_s25 = sshll.u32 %s630_s24, 4  ;;  %s386_s25 = int_to_ptr.vmem [resolvable:$true] %s385_s25 }
  0x37   :  { %441 = vmatprep.subr.bf16.mxu0 %v628_v0  ;;  %449 = vmatprep.subr.bf16.mxu1 %v628_v0  ;;  %v505_v13 = vld [vmem:[#allocation7] sm:$0xff]   ;;  %v506_v14 = vld [vmem:[#allocation8 + $0x38] sm:$0xff]   ;;  %v507_v15 = vld [vmem:[#allocation8 + $0x30] sm:$0xff]   ;;  %p599_p7 = scmp.lt.s32.totalorder %s386_s25, %s386_s25 }
  0x38   :  { %v508_v16 = vld [vmem:[#allocation8 + $0x28] sm:$0xff]   ;;  %v509_v17 = vld [vmem:[#allocation8 + $0x20] sm:$0xff]   ;;  %v510_v18 = vld [vmem:[#allocation8 + $0x18] sm:$0xff]  }
  0x39   :  { %v511_v19 = vld [vmem:[#allocation8 + $0x10] sm:$0xff]   ;;  %v396_v20 = vld [vmem:[%s730_s2] ss:$0 sm:$0xff]  ;;  %v513_v29 = vld [vmem:[#allocation8] sm:$0xff]  }
  0x3a   :  { %442 = vmatpush3.bf16.msra.mxu0 %v497_v2  ;;  %450 = vmatpush3.bf16.msra.mxu1 %v499_v6  ;;  %v512_v28 = vld [vmem:[#allocation8 + $0x8] sm:$0xff]  }
  0x3b   :  { %467 = vmatprep.subr.bf16.mxu0 %v628_v0  ;;  %451 = vmatprep.subr.bf16.mxu1 %v628_v0  ;;  %v400_v30 = vld [vmem:[%s732_s4] ss:$0 sm:$0xff]  ;;  %s594_s4 = scalar_lea.vmem %s386_s25, 128 }
  0x3c   :  { %v417_v38 = vld [vmem:[%s734_s6] ss:$0 sm:$0xff]  ;;  %p595_p6 = scmp.ne.s32.totalorder %s386_s25, %s594_s4  ;;  %p600_p8 = scmp.lt.s32.totalorder %s594_s4, %s594_s4 }
  0x3d   :  { %444 = vmatmul.mubr.msk.bf16.vlgmr.msra.gmra.mxu0 %vm102_vm2, %v82_v7 }
  0x3e   :  { %483 = vmatprep.mubr.msk.bf16.mxu0 %vm629_vm0, %v628_v0  ;;  %452 = vmatpush3.bf16.msra.mxu1 %v500_v8  ;;  %p601_p9 = por %p600_p8, %p599_p7 }
  0x3f   :  { %453 = vmatprep.subr.bf16.mxu1 %v628_v0  ;;  %468 = vmatpush3.bf16.msra.mxu0 %v506_v14 }
  0x40   :  { %469 = vmatprep.subr.bf16.mxu0 %v628_v0  ;;  %p602_p10 = pnand %p601_p9, %p595_p6 }
  0x42   :  { %454 = vmatpush3.bf16.msra.mxu1 %v501_v9 }
  0x43   :  { %455 = vmatprep.subr.bf16.mxu1 %v628_v0  ;;  %470 = vmatpush3.bf16.msra.mxu0 %v507_v15 }
  0x44   :  { %471 = vmatprep.subr.bf16.mxu0 %v628_v0 }
  0x46   :  { %456 = vmatpush3.bf16.msra.mxu1 %v502_v10 }
  0x47   :  { %457 = vmatprep.subr.bf16.mxu1 %v628_v0  ;;  %472 = vmatpush3.bf16.msra.mxu0 %v508_v16 }
  0x48   :  { %473 = vmatprep.subr.bf16.mxu0 %v628_v0 }
  0x4a   :  { %458 = vmatpush3.bf16.msra.mxu1 %v503_v11 }
  0x4b   :  { %459 = vmatprep.subr.bf16.mxu1 %v628_v0  ;;  %474 = vmatpush3.bf16.msra.mxu0 %v509_v17 }
  0x4c   :  { %475 = vmatprep.subr.bf16.mxu0 %v628_v0 }
  0x4e   :  { %460 = vmatpush3.bf16.msra.mxu1 %v504_v12 }
  0x4f   :  { %461 = vmatprep.subr.bf16.mxu1 %v628_v0  ;;  %476 = vmatpush3.bf16.msra.mxu0 %v510_v18 }
  0x50   :  { %477 = vmatprep.subr.bf16.mxu0 %v628_v0 }
  0x52   :  { %462 = vmatpush3.bf16.msra.mxu1 %v505_v13 }
  0x53   :  { %478 = vmatpush3.bf16.msra.mxu0 %v511_v19 }
  0x54   :  { %479 = vmatprep.subr.bf16.mxu0 %v628_v0 }
  0x57   :  { %480 = vmatpush3.bf16.msra.mxu0 %v512_v28 }
  0x58   :  { %481 = vmatprep.subr.bf16.mxu0 %v628_v0 }
  0x5b   :  { %482 = vmatpush3.bf16.msra.mxu0 %v513_v29 }
  0xfd   :  { %v144_v21 = vpop.f32.mrf.mxu0 }
  0xfe   :  { %v145_v22 = vadd.f32 %v396_v20, %v144_v21 }
  0xff   :  { %v445_v23 = vpop.f32.mrf.mxu0 }
 0x100   :  { %v150_v24 = vmax.f32 %v145_v22, 0.0 }
 0x101   :  { %v147_v25 = vpop.f32.mrf.mxu0 }
 0x102   :  { %v151_v26 = vpack.c.bf16 %v150_v24, %v150_v24 }
 0x103   :  { %v446_v27 = vpop.f32.mrf.mxu0 }
 0x104   :  { %464 = vmatmul.mubr.bf16.vlgmr.msra.gmra.mxu1 %v151_v26 }
 0x1c4   :  { %v257_v31 = vpop.f32.mrf.mxu1 }
 0x1c5   :  { %v258_v32 = vadd.f32 %v400_v30, %v257_v31 }
 0x1c6   :  { %v465_v33 = vpop.f32.mrf.mxu1 }
 0x1c7   :  { %v263_v34 = vmax.f32 %v258_v32, 0.0 }
 0x1c8   :  { %v260_v35 = vpop.f32.mrf.mxu1 }
 0x1c9   :  { %v264_v36 = vpack.c.bf16 %v263_v34, %v263_v34 }
 0x1ca   :  { %v466_v37 = vpop.f32.mrf.mxu1 }
 0x1cb   :  { %484 = vmatmul.mubr.bf16.vlgmr.msra.gmra.mxu0 %v264_v36 }
 0x28b   :  { %v363_v39 = vpop.f32.mrf.mxu0 }
 0x28c   :  { %v376_v40 = vadd.f32 %v417_v38, %v363_v39 }
 0x28d   :  { %v485_v41 = vpop.f32.mrf.mxu0 }
 0x28e   :  { %378 = vst.msk [vmem:[#allocation10] sm:$0xff] %vm377_vm3, %v376_v40 }
 0x28f   :  { %v366_v42 = vpop.f32.mrf.mxu0 }
 0x290   :  { %605 = shalt.err (!%p602_p10)
}
 0x291   :  { %388 = dma.vmem_to_hbm [thread:$0]  %s386_s25, 128, %s735_s7, [#allocation4]   ;;  %v486_v43 = vpop.f32.mrf.mxu0 }
 0x292   :  { %620 = dma.done.wait [#allocation4], 128  }
 0x293   :  { %621 = vsyncadd [#allocation4], 4294967168 }
 0x294   :  { %392 = vsyncpa [#allocation3], 1 }
 0x295   :  { %393 = vsyncpa [#allocation6], 1 }
 0x296   :  { %394 = vsyncpa [#allocation9], 1 }
 0x297   :  { %395 = vsyncpa [#allocation4], 1 }

</bundles_post_ra>
